<compile_context>
chip_gen: v6e
topology: v6e:2x2x1
jax: 0.10.0
libtpu: 0.0.40
codegen_flags: <defaults>
</compile_context>

<pallas_src>
import functools

import jax
import jax.numpy as jnp
from jax.experimental import pallas as pl
from jax.experimental.pallas import tpu as pltpu


def conv1x1_add_kernel(x_ref, w_ref, t_ref, o_ref):
    # x_ref: (N, Cin+1, S)  w_ref: (Cout, Cin+1)  t_ref/o_ref: (N, Cout, S)
    # 1x1 conv (+ folded bias) == channel matmul on the MXU, spatial on the lanes;
    # then the random-tensor add on the VPU.  N is tiny/static -> unrolled.
    w = w_ref[...]
    for n in range(x_ref.shape[0]):
        y = jnp.dot(w, x_ref[n], preferred_element_type=jnp.float32)
        o_ref[n] = (y + t_ref[n]).astype(o_ref.dtype)


@functools.partial(jax.jit, donate_argnums=(3,))
def conv1x1_pad1_add(x_nchw, weight, bias, t_nchw):
    """Conv2d(kernel=1, stride=1, padding=1) + elementwise add, NCHW in/out. t is donated."""
    N, Cin, H, W = x_nchw.shape
    Cout = weight.shape[0]
    Hp, Wp = H + 2, W + 2
    S = Hp * Wp
    Ck = Cin + 1  # +1 constant-ones channel carrying the bias

    # Glue (no transposes): spatial zero pad (padding=1), then append a constant-1
    # channel so every (including border) output pixel gets +bias from the matmul.
    x_pad = jnp.pad(x_nchw, ((0, 0), (0, 0), (1, 1), (1, 1)))
    x_aug = jnp.pad(x_pad, ((0, 0), (0, 1), (0, 0), (0, 0)), constant_values=1.0)
    x_flat = x_aug.reshape(N, Ck, S)

    t_flat = t_nchw.reshape(N, Cout, S)                      # free reshape (NCHW order kept)
    w_aug = jnp.concatenate(
        [weight.reshape(Cout, Cin), bias.reshape(Cout, 1)], axis=1)  # [Cout, Cin+1]

    cost = pl.CostEstimate(
        flops=2 * N * Cout * Ck * S,
        transcendentals=0,
        bytes_accessed=4 * (N * Ck * S + Cout * Ck + 2 * N * Cout * S),
    )

    out_flat = pl.pallas_call(
        conv1x1_add_kernel,
        out_shape=jax.ShapeDtypeStruct((N, Cout, S), x_nchw.dtype),
        grid=(1,),  # one step: everything (~150 KB) is VMEM-resident
        in_specs=[
            pl.BlockSpec((N, Ck, S), lambda i: (0, 0, 0)),    # padded inputs (all images)
            pl.BlockSpec((Cout, Ck), lambda i: (0, 0)),       # weights + bias column
            pl.BlockSpec((N, Cout, S), lambda i: (0, 0, 0)),  # random tensor t
        ],
        out_specs=pl.BlockSpec((N, Cout, S), lambda i: (0, 0, 0)),
        input_output_aliases={2: 0},  # t (donated under jit) -> output buffer reuse
        compiler_params=pltpu.CompilerParams(
            dimension_semantics=("arbitrary",)),
        cost_estimate=cost,
    )(x_flat, w_aug, t_flat)

    # Free reshape back to NCHW.
    return out_flat.reshape(N, Cout, Hp, Wp)


if __name__ == "__main__":
    key = jax.random.PRNGKey(0)
    kx, kw, kb, kt = jax.random.split(key, 4)

    # Small shapes consistent with the module: Conv2d(17 -> 10, 1x1, pad=1)
    N, Cin, H, W = 2, 17, 16, 16
    Cout = 10
    Hp, Wp = H + 2, W + 2

    x = jax.random.normal(kx, (N, Cin, H, W), dtype=jnp.float32)
    weight = jax.random.normal(kw, (Cout, Cin, 1, 1), dtype=jnp.float32) * 0.1
    bias = jax.random.normal(kb, (Cout,), dtype=jnp.float32) * 0.1
    # the "torch.randn(v1.shape)" tensor, generated deterministically
    t = jax.random.normal(kt, (N, Cout, Hp, Wp), dtype=jnp.float32)

    # Reference (plain JAX) computed BEFORE the call: t is donated to the kernel.
    x_pad = jnp.pad(x, ((0, 0), (0, 0), (1, 1), (1, 1)))
    ref = jnp.einsum("nchw,oc->nohw", x_pad, weight.reshape(Cout, Cin)) \
        + bias.reshape(1, Cout, 1, 1) + t
    ref = jax.block_until_ready(ref)

    out = conv1x1_pad1_add(x, weight, bias, t)
    out = jax.block_until_ready(out)

    assert out.shape == (N, Cout, Hp, Wp)
    assert jnp.allclose(out, ref, atol=1e-4, rtol=1e-4)

    print("KERNEL_OK")
</pallas_src>

<mosaic_0001>
module attributes {stable_mosaic.version = 11 : i64} {
  func.func @conv1x1_add_kernel(%arg0: i32, %arg1: memref<2x18x324xf32, #tpu.memory_space<vmem>>, %arg2: memref<10x18xf32, #tpu.memory_space<vmem>>, %arg3: memref<2x10x324xf32, #tpu.memory_space<vmem>>, %arg4: memref<2x10x324xf32, #tpu.memory_space<vmem>>) attributes {dimension_semantics = [#tpu.dimension_semantics<arbitrary>], iteration_bounds = array<i64: 1>, scalar_prefetch = 0 : i64, scratch_operands = 0 : i64, tpu.core_type = #tpu.core_type<tc>, window_params = [{pipeline_mode = #tpu.pipeline_mode<synchronous>, transform_indices = @transform_0, window_bounds = array<i64: 2, 18, 324>}, {pipeline_mode = #tpu.pipeline_mode<synchronous>, transform_indices = @transform_1, window_bounds = array<i64: 10, 18>}, {pipeline_mode = #tpu.pipeline_mode<synchronous>, transform_indices = @transform_2, window_bounds = array<i64: 2, 10, 324>}, {pipeline_mode = #tpu.pipeline_mode<synchronous>, transform_indices = @transform_3, window_bounds = array<i64: 2, 10, 324>}]} {
    %c0 = arith.constant 0 : index
    %c0_0 = arith.constant 0 : index
    %0 = vector.load %arg2[%c0, %c0_0] : memref<10x18xf32, #tpu.memory_space<vmem>>, vector<10x18xf32>
    %c0_1 = arith.constant 0 : index
    %c0_2 = arith.constant 0 : index
    %c0_3 = arith.constant 0 : index
    %1 = vector.load %arg1[%c0_1, %c0_2, %c0_3] : memref<2x18x324xf32, #tpu.memory_space<vmem>>, vector<1x18x324xf32>
    %2 = vector.shape_cast %1 : vector<1x18x324xf32> to vector<18x324xf32>
    %cst = arith.constant dense<0.000000e+00> : vector<10x324xf32>
    %3 = tpu.matmul %0, %2, %cst {dimension_numbers = #tpu.dot_dimension_numbers<[1], [0], [0], [1], [0, 0, 1, 1], [], []>} : vector<10x18xf32>, vector<18x324xf32>, vector<10x324xf32> -> vector<10x324xf32>
    %c0_4 = arith.constant 0 : index
    %c0_5 = arith.constant 0 : index
    %c0_6 = arith.constant 0 : index
    %4 = vector.load %arg3[%c0_4, %c0_5, %c0_6] : memref<2x10x324xf32, #tpu.memory_space<vmem>>, vector<1x10x324xf32>
    %5 = vector.shape_cast %4 : vector<1x10x324xf32> to vector<10x324xf32>
    %6 = arith.addf %3, %5 : vector<10x324xf32>
    %c0_7 = arith.constant 0 : index
    %c0_8 = arith.constant 0 : index
    %c0_9 = arith.constant 0 : index
    %7 = vector.load %arg4[%c0_7, %c0_8, %c0_9] : memref<2x10x324xf32, #tpu.memory_space<vmem>>, vector<1x10x324xf32>
    %8 = vector.shape_cast %7 : vector<1x10x324xf32> to vector<10x324xf32>
    %9 = vector.shape_cast %6 : vector<10x324xf32> to vector<1x10x324xf32>
    tpu.vector_store %arg4[%c0_7, %c0_8, %c0_9], %9 {strides = array<i32>} : memref<2x10x324xf32, #tpu.memory_space<vmem>>, vector<1x10x324xf32>,
    %c1 = arith.constant 1 : index
    %c0_10 = arith.constant 0 : index
    %c0_11 = arith.constant 0 : index
    %10 = vector.load %arg1[%c1, %c0_10, %c0_11] : memref<2x18x324xf32, #tpu.memory_space<vmem>>, vector<1x18x324xf32>
    %11 = vector.shape_cast %10 : vector<1x18x324xf32> to vector<18x324xf32>
    %cst_12 = arith.constant dense<0.000000e+00> : vector<10x324xf32>
    %12 = tpu.matmul %0, %11, %cst_12 {dimension_numbers = #tpu.dot_dimension_numbers<[1], [0], [0], [1], [0, 0, 1, 1], [], []>} : vector<10x18xf32>, vector<18x324xf32>, vector<10x324xf32> -> vector<10x324xf32>
    %c1_13 = arith.constant 1 : index
    %c0_14 = arith.constant 0 : index
    %c0_15 = arith.constant 0 : index
    %13 = vector.load %arg3[%c1_13, %c0_14, %c0_15] : memref<2x10x324xf32, #tpu.memory_space<vmem>>, vector<1x10x324xf32>
    %14 = vector.shape_cast %13 : vector<1x10x324xf32> to vector<10x324xf32>
    %15 = arith.addf %12, %14 : vector<10x324xf32>
    %c1_16 = arith.constant 1 : index
    %c0_17 = arith.constant 0 : index
    %c0_18 = arith.constant 0 : index
    %16 = vector.load %arg4[%c1_16, %c0_17, %c0_18] : memref<2x10x324xf32, #tpu.memory_space<vmem>>, vector<1x10x324xf32>
    %17 = vector.shape_cast %16 : vector<1x10x324xf32> to vector<10x324xf32>
    %18 = vector.shape_cast %15 : vector<10x324xf32> to vector<1x10x324xf32>
    tpu.vector_store %arg4[%c1_16, %c0_17, %c0_18], %18 {strides = array<i32>} : memref<2x10x324xf32, #tpu.memory_space<vmem>>, vector<1x10x324xf32>,
    return
  }
  func.func @transform_0(%arg0: i32) -> (i32, i32, i32) {
    %c0_i32 = arith.constant 0 : i32
    %c0_i32_0 = arith.constant 0 : i32
    %c0_i32_1 = arith.constant 0 : i32
    %c0_i32_2 = arith.constant 0 : i32
    return %c0_i32, %c0_i32_0, %c0_i32_1 : i32, i32, i32
  }
  func.func @transform_1(%arg0: i32) -> (i32, i32) {
    %c0_i32 = arith.constant 0 : i32
    %c0_i32_0 = arith.constant 0 : i32
    %c0_i32_1 = arith.constant 0 : i32
    return %c0_i32, %c0_i32_0 : i32, i32
  }
  func.func @transform_2(%arg0: i32) -> (i32, i32, i32) {
    %c0_i32 = arith.constant 0 : i32
    %c0_i32_0 = arith.constant 0 : i32
    %c0_i32_1 = arith.constant 0 : i32
    %c0_i32_2 = arith.constant 0 : i32
    return %c0_i32, %c0_i32_0, %c0_i32_1 : i32, i32, i32
  }
  func.func @transform_3(%arg0: i32) -> (i32, i32, i32) {
    %c0_i32 = arith.constant 0 : i32
    %c0_i32_0 = arith.constant 0 : i32
    %c0_i32_1 = arith.constant 0 : i32
    %c0_i32_2 = arith.constant 0 : i32
    return %c0_i32, %c0_i32_0, %c0_i32_1 : i32, i32, i32
  }
}

</mosaic_0001>

<bundles_post_ra>
// kernel: conv1x1_pad1_add.1
= control target key start
LH: loop header
LB: loop body
LE: loop exit
PB: predicated region body
PF: predicated region fallthrough
CT: control target
= control target key end

     0   :  { %vm38_vm0 = vcmask 1041408   ;;  %v461_v3 = vmov 0.0   ;;  %vm31_vm1 = vcmask 146432   ;;  %vm206_vm2 = vcmask 549888   ;;  %s634_s0 = inlined_call_operand.vmem [shape: f32[2,18,324], index: 0, kind: input, shape index: {}]   ;;  %s635_s1 = inlined_call_operand.vmem [shape: f32[10,18], index: 1, kind: input, shape index: {}]   ;;  %s636_s2 = inlined_call_operand.vmem [shape: f32[2,10,324], index: 2, kind: input, shape index: {}, may-alias: {2,3}]   ;;  %s637_s3 = inlined_call_operand.vmem [shape: f32[2,10,324], index: 3, kind: output, shape index: {}, may-alias: {2,3}]  }
   0x1   :  { %v23_v0 = vld [vmem:[%s634_s0 + $0x38] sm:$0x3]  ;;  %v24_v1 = vld [vmem:[%s634_s0 + $0x40] sm:$0x3]  ;;  %v22_v2 = vld [vmem:[%s634_s0 + $0x30] sm:$0x3]  ;;  %112 = vmatprep.mubr.f32.mxu0 %v461_v3 }
   0x2   :  { %397 = vmatprep.subr.msk.mxu0 %vm38_vm0, %v23_v0  ;;  %442 = vmatprep.subr.msk.mxu1 %vm38_vm0, %v24_v1  ;;  %v20_v4 = vld [vmem:[%s634_s0 + $0x20] sm:$0xff]  ;;  %v21_v5 = vld [vmem:[%s634_s0 + $0x28] sm:$0xff]  ;;  %v19_v6 = vld [vmem:[%s634_s0 + $0x18] sm:$0xff]  ;;  %vm202_vm3 = vcmask 556032  }
   0x3   :  { %398 = vmatpush1.msk.msra.mxu0 %vm38_vm0, %v22_v2  ;;  %443 = vmatpush3.msk.msra.mxu1 %vm38_vm0, %v24_v1  ;;  %v17_v7 = vld [vmem:[%s634_s0 + $0x8] sm:$0xff]  ;;  %v18_v8 = vld [vmem:[%s634_s0 + $0x10] sm:$0xff]  ;;  %v16_v9 = vld [vmem:[%s634_s0] sm:$0xff] }
   0x4   :  { %76 = vmatprep.subr.mxu0 %v20_v4  ;;  %444 = vmatprep.subr.mxu1 %v21_v5  ;;  %v14_v10 = vld [vmem:[%s635_s1] sm:$0xff]  ;;  %v15_v11 = vld [vmem:[%s635_s1 + $0x8] sm:$0x3]  ;;  %v410_v13 = vld [vmem:[%s634_s0 + $0x78] sm:$0x3] }
   0x5   :  { %77 = vmatpush1.msra.mxu0 %v19_v6  ;;  %445 = vmatpush3.msra.mxu1 %v21_v5  ;;  %v411_v12 = vld [vmem:[%s634_s0 + $0x80] sm:$0x3]  ;;  %v412_v14 = vld [vmem:[%s634_s0 + $0x88] sm:$0x3]  ;;  %v405_v17 = vld [vmem:[%s634_s0 + $0x50] sm:$0xff] }
   0x6   :  { %78 = vmatprep.subr.mxu0 %v17_v7  ;;  %446 = vmatprep.subr.mxu1 %v18_v8  ;;  %v408_v15 = vld [vmem:[%s634_s0 + $0x68] sm:$0xff]  ;;  %v407_v16 = vld [vmem:[%s634_s0 + $0x60] sm:$0xff]  ;;  %v409_v18 = vld [vmem:[%s634_s0 + $0x70] sm:$0xff] }
   0x7   :  { %79 = vmatpush1.msra.mxu0 %v16_v9  ;;  %447 = vmatpush3.msra.mxu1 %v18_v8  ;;  %v404_v19 = vld [vmem:[%s634_s0 + $0x48] sm:$0xff]  ;;  %v406_v20 = vld [vmem:[%s634_s0 + $0x58] sm:$0xff]  ;;  %v25_v21 = vld [vmem:[%s636_s2] sm:$0xff] }
   0x8   :  { %448 = vmatprep.mubr.msk.f32.mxu1 %vm31_vm1, %v14_v10  ;;  %399 = vmatmul.mubr.msk.f32.vlgmr.msra.gmra.mxu0 %vm31_vm1, %v14_v10  ;;  %v30_v22 = vld [vmem:[%s636_s2 + $0x28] sm:$0x3]  ;;  %v27_v27 = vld [vmem:[%s636_s2 + $0x10] sm:$0xff] }
   0x9   :  { %449 = vmatmul.mubr.msk.f32.vlgmr.msra.gmra.mxu1 %vm31_vm1, %v15_v11  ;;  %419 = vmatprep.subr.msk.mxu1 %vm38_vm0, %v411_v12  ;;  %v26_v24 = vld [vmem:[%s636_s2 + $0x8] sm:$0xff] }
   0xa   :  { %420 = vmatpush1.msk.msra.mxu1 %vm38_vm0, %v410_v13  ;;  %451 = vmatprep.subr.msk.mxu0 %vm38_vm0, %v412_v14 }
   0xb   :  { %262 = vmatprep.subr.mxu1 %v408_v15  ;;  %452 = vmatpush3.msk.msra.mxu0 %vm38_vm0, %v412_v14 }
   0xc   :  { %118 = vmatprep.mubr.f32.mxu0 %v461_v3  ;;  %263 = vmatpush1.msra.mxu1 %v407_v16 }
   0xd   :  { %400 = vmatmul.mubr.msk.f32.gmra.mxu0 %vm31_vm1, %v15_v11  ;;  %264 = vmatprep.subr.mxu1 %v405_v17 }
   0xe   :  { %453 = vmatprep.subr.mxu0 %v409_v18  ;;  %265 = vmatpush1.msra.mxu1 %v404_v19 }
   0xf   :  { %298 = vmatprep.mubr.f32.mxu1 %v461_v3  ;;  %454 = vmatpush3.msra.mxu0 %v409_v18 }
  0x10   :  { %421 = vmatmul.mubr.msk.f32.vlgmr.msra.gmra.mxu1 %vm31_vm1, %v14_v10  ;;  %455 = vmatprep.subr.mxu0 %v406_v20 }
  0x11   :  { %456 = vmatpush3.msra.mxu0 %v406_v20  ;;  %457 = vmatprep.mubr.msk.f32.mxu0 %vm31_vm1, %v14_v10 }
  0x12   :  { %458 = vmatmul.mubr.msk.f32.vlgmr.msra.gmra.mxu0 %vm31_vm1, %v15_v11  ;;  %304 = vmatprep.mubr.f32.mxu1 %v461_v3 }
  0x14   :  { %422 = vmatmul.mubr.msk.f32.gmra.mxu1 %vm31_vm1, %v15_v11 }
  0xc8   :  { %v114_v23 = vpop.f32.mrf.mxu0 }
  0xc9   :  { %v115_v25 = vadd.f32 %v114_v23, %v25_v21  ;;  %v450_v26 = vpop.f32.mrf.mxu1 }
  0xca   :  { %v197_v28 = vadd.f32 %v450_v26, %v30_v22  ;;  %v116_v29 = vpop.f32.mrf.mxu0 }
  0xcb   :  { %200 = vst [vmem:[%s637_s3] sm:$0xff] %v115_v25  ;;  %v117_v30 = vadd.f32 %v116_v29, %v26_v24  ;;  %v191_v31 = vpop.f32.mrf.mxu1 }
  0xcc   :  { %v192_v33 = vadd.f32 %v191_v31, %v27_v27 }
  0xcd   :  { %v120_v34 = vpop.f32.mrf.mxu0 }
  0xcf   :  { %v122_v38 = vpop.f32.mrf.mxu0 }
  0xd0   :  { %v300_v40 = vpop.f32.mrf.mxu1 }
  0xd2   :  { %v28_v32 = vld [vmem:[%s636_s2 + $0x18] sm:$0x3]  ;;  %v302_v44 = vpop.f32.mrf.mxu1  ;;  %v459_v45 = vpop.f32.mrf.mxu0 }
  0xd3   :  { %207 = vst.msk [vmem:[%s637_s3 + $0x28] sm:$0x3] %vm206_vm2, %v197_v28  ;;  %201 = vst [vmem:[%s637_s3 + $0x8] sm:$0xff] %v117_v30  ;;  %v121_v36 = vadd.f32 %v120_v34, %v28_v32 }
  0xd4   :  { %v306_v50 = vpop.f32.mrf.mxu1  ;;  %v377_v51 = vpop.f32.mrf.mxu0 }
  0xd6   :  { %v308_v55 = vpop.f32.mrf.mxu1 }
  0xda   :  { %v29_v35 = vld [vmem:[%s636_s2 + $0x20] sm:$0x3] }
  0xdb   :  { %203 = vst.msk [vmem:[%s637_s3 + $0x10] sm:$0xff] %vm202_vm3, %v192_v33  ;;  %v123_v39 = vadd.f32 %v122_v38, %v29_v35 }
  0xe2   :  { %v413_v37 = vld [vmem:[%s636_s2 + $0x30] sm:$0xff] }
  0xe3   :  { %204 = vst [vmem:[%s637_s3 + $0x18] sm:$0x3] %v121_v36  ;;  %v301_v43 = vadd.f32 %v413_v37, %v300_v40 }
  0xea   :  { %v414_v41 = vld [vmem:[%s636_s2 + $0x38] sm:$0xff] }
  0xeb   :  { %v418_v42 = vld [vmem:[%s636_s2 + $0x58] sm:$0x3]  ;;  %v303_v48 = vadd.f32 %v414_v41, %v302_v44 }
  0xec   :  { %205 = vst [vmem:[%s637_s3 + $0x20] sm:$0x3] %v123_v39  ;;  %v383_v49 = vadd.f32 %v459_v45, %v418_v42 }
  0xf3   :  { %v416_v46 = vld [vmem:[%s636_s2 + $0x48] sm:$0x3]  ;;  %v415_v47 = vld [vmem:[%s636_s2 + $0x40] sm:$0xff] }
  0xf4   :  { %426 = vst [vmem:[%s637_s3 + $0x30] sm:$0xff] %v301_v43  ;;  %v307_v53 = vadd.f32 %v416_v46, %v306_v50  ;;  %v378_v54 = vadd.f32 %v415_v47, %v377_v51 }
  0xfb   :  { %v417_v52 = vld [vmem:[%s636_s2 + $0x50] sm:$0x3] }
  0xfc   :  { %427 = vst [vmem:[%s637_s3 + $0x38] sm:$0xff] %v303_v48  ;;  %431 = vst.msk [vmem:[%s637_s3 + $0x58] sm:$0x3] %vm206_vm2, %v383_v49  ;;  %v309_v56 = vadd.f32 %v417_v52, %v308_v55 }
  0xfd   :  { %429 = vst [vmem:[%s637_s3 + $0x48] sm:$0x3] %v307_v53  ;;  %428 = vst.msk [vmem:[%s637_s3 + $0x40] sm:$0xff] %vm202_vm3, %v378_v54 }
  0xfe   :  { %430 = vst [vmem:[%s637_s3 + $0x50] sm:$0x3] %v309_v56 }

</bundles_post_ra>
